<compile_context>
chip_gen: v6e
topology: v6e:2x2x1
jax: 0.10.0
libtpu: 0.0.40
codegen_flags: <defaults>
</compile_context>

<pallas_src>
import functools
import numpy as np
import jax
import jax.numpy as jnp
from jax.experimental import pallas as pl
from jax.experimental.pallas import tpu as pltpu


def spe_kernel(x_ref, xq_ref, xk_ref, e_ref,
               w_idn_ref, s_idn_ref, b_idn_ref,
               w_attn_ref, s_bn1_ref, b_bn1_ref,
               w_conv_ref, s_bn2_ref, b_bn2_ref,
               o_ref, *, groups, width, h):
    f32 = jnp.float32
    hi = jax.lax.Precision.HIGHEST

    x = x_ref[...].astype(f32)                               # (C1, TB*HW)

    # ---- identity branch: ConvBn(channel1 -> channel2), 1x1 conv == matmul ----
    idn = jnp.dot(w_idn_ref[...].astype(f32), x,
                  preferred_element_type=f32, precision=hi)  # (C2, TB*HW)
    idn = idn * s_idn_ref[...] + b_idn_ref[...]              # folded BN

    # ---- SpeGSA attention scores from the pre-pooled tensors ----
    xq = xq_ref[...].astype(f32)                             # (width, TB, P)  maxpool
    xk = xk_ref[...].astype(f32)                             # (width, TB, P)  avgpool
    # fold the depthwise (3,1)-stride-(3,1) attnconv weight into xq (linearity)
    wxq = xq * w_attn_ref[...]                               # (width, TB, P)

    scale = 4.0 / h
    p_cols = []
    for g in range(groups):                                  # static, tiny
        wq_g = wxq[3 * g] + wxq[3 * g + 1] + wxq[3 * g + 2]  # (TB, P)
        s = [scale * jnp.sum(wq_g * xk[3 * g + j], axis=-1, keepdims=True)
             for j in range(3)]                              # 3 x (TB, 1)
        # softmax over the 3 taps
        m = jnp.maximum(jnp.maximum(s[0], s[1]), s[2])
        ex = [jnp.exp(sj - m) for sj in s]
        denom = ex[0] + ex[1] + ex[2]
        p_cols += [ej / denom for ej in ex]                  # (TB, 1) each
    p_bt = jnp.concatenate(p_cols, axis=-1)                  # (TB, width), col c = 3g+j

    # Broadcast the per-batch softmax weights across each HW lane chunk with a
    # 0/1 expansion matmul:  (width, TB) @ (TB, TB*HW) -> (width, TB*HW)
    p_big = jnp.dot(p_bt.T, e_ref[...],
                    preferred_element_type=f32, precision=hi)

    # out[g, n] = sum_j p[b(n), g, j] * x[3g+j, n]
    prod = p_big * x[:width, :]                              # (width, TB*HW)
    mix = jnp.concatenate(
        [jnp.sum(prod[3 * g:3 * g + 3, :], axis=0, keepdims=True)
         for g in range(groups)], axis=0)                    # (groups, TB*HW)

    # BatchNorm2d(groups) + ReLU
    mix = jnp.maximum(mix * s_bn1_ref[...] + b_bn1_ref[...], 0.0)

    # ConvBn(groups -> channel2): 1x1 conv == matmul, folded BN
    out = jnp.dot(w_conv_ref[...].astype(f32), mix,
                  preferred_element_type=f32, precision=hi)  # (C2, TB*HW)
    out = out * s_bn2_ref[...] + b_bn2_ref[...]

    # residual add + ReLU
    o_ref[...] = jnp.maximum(idn + out, 0.0).astype(o_ref.dtype)


def spe_forward(x, params, *, target_lanes=4096):
    B, C1, H, W = x.shape
    C2 = params["w_idn"].shape[0]
    width = int(params["width"])
    groups = width // 3
    HW = H * W
    P = (H // 4) * (W // 4)
    dtype = x.dtype

    # ---- batch tile TB: fuse TB*HW lanes per grid step (~4K lanes target) ----
    # TB must divide B and be 8-aligned (or == B) so the (width, TB, P) pooled
    # block keeps an (8,128)-legal tiling.
    max_tb = max(1, target_lanes // HW)
    if B <= max_tb:
        tb = B
    else:
        tb = max([d for d in range(8, max_tb + 1, 8) if B % d == 0], default=B)
    n_lanes = tb * HW
    grid = (B // tb,)

    # ---- layout glue (channel-major, lane-dense); input dtype kept narrow ----
    x_cm = jnp.transpose(x.reshape(B, C1, HW), (1, 0, 2)).reshape(C1, B * HW)

    # 4x4 MaxPool / AvgPool pre-reduced here (per perf review: do not ship the
    # duplicated (..., P, 16) window tensor); pooled tensors are ~1/16 of x.
    xw = x[:, :width].reshape(B, width, H // 4, 4, W // 4, 4)
    xq = jnp.max(xw, axis=(3, 5)).reshape(B, width, P)       # MaxPool2d(4,4)
    xk = jnp.mean(xw, axis=(3, 5)).reshape(B, width, P)      # AvgPool2d(4,4)
    xq_cm = jnp.transpose(xq, (1, 0, 2))                     # (width, B, P)
    xk_cm = jnp.transpose(xk, (1, 0, 2))

    # 0/1 expansion matrix: E[b, n] = 1 iff n // HW == b   (n in [0, TB*HW))
    e_mat = jnp.kron(jnp.eye(tb, dtype=jnp.float32),
                     jnp.ones((1, HW), dtype=jnp.float32))   # (TB, TB*HW)

    # row 3g+i holds attnconv weight w_attn[g, i]
    w_attn_rows = params["w_attn"].reshape(width, 1, 1)

    kernel = functools.partial(spe_kernel, groups=groups, width=width, h=H)

    def const_spec(a):
        nd = a.ndim
        return pl.BlockSpec(a.shape, lambda i, _nd=nd: (0,) * _nd)

    out_cm = pl.pallas_call(
        kernel,
        out_shape=jax.ShapeDtypeStruct((C2, B * HW), dtype),
        grid=grid,
        in_specs=[
            pl.BlockSpec((C1, n_lanes), lambda i: (0, i)),
            pl.BlockSpec((width, tb, P), lambda i: (0, i, 0)),
            pl.BlockSpec((width, tb, P), lambda i: (0, i, 0)),
            const_spec(e_mat),
            const_spec(params["w_idn"]),
            const_spec(params["s_idn"]),
            const_spec(params["b_idn"]),
            const_spec(w_attn_rows),
            const_spec(params["s_bn1"]),
            const_spec(params["b_bn1"]),
            const_spec(params["w_conv"]),
            const_spec(params["s_bn2"]),
            const_spec(params["b_bn2"]),
        ],
        out_specs=pl.BlockSpec((C2, n_lanes), lambda i: (0, i)),
        compiler_params=pltpu.CompilerParams(
            dimension_semantics=("parallel",)),   # shard batch tiles over v7x's 2 TCs
    )(x_cm, xq_cm, xk_cm, e_mat,
      params["w_idn"], params["s_idn"], params["b_idn"],
      w_attn_rows, params["s_bn1"], params["b_bn1"],
      params["w_conv"], params["s_bn2"], params["b_bn2"])

    # layout glue back to NCHW
    return out_cm.reshape(C2, B, HW).transpose(1, 0, 2).reshape(B, C2, H, W)


def make_params(key, channel1, channel2):
    """Deterministic synthetic parameters; BN folded to (scale, bias) in eval mode."""
    width = channel1 // 3 * 3
    groups = width // 3
    ks = jax.random.split(key, 15)
    eps = 1e-5

    def folded_bn(kg, kb, km, kv, n):
        gamma = jax.random.uniform(kg, (n,), jnp.float32, 0.5, 1.5)
        beta = jax.random.normal(kb, (n,), jnp.float32) * 0.1
        mean = jax.random.normal(km, (n,), jnp.float32) * 0.1
        var = jax.random.uniform(kv, (n,), jnp.float32, 0.5, 1.5)
        scale = gamma / jnp.sqrt(var + eps)
        bias = beta - mean * scale
        return scale.reshape(n, 1), bias.reshape(n, 1)

    w_idn = jax.random.normal(ks[0], (channel2, channel1), jnp.float32) * 0.2
    s_idn, b_idn = folded_bn(ks[1], ks[2], ks[3], ks[4], channel2)
    w_attn = jax.random.normal(ks[5], (groups, 3), jnp.float32) * 0.5
    s_bn1, b_bn1 = folded_bn(ks[6], ks[7], ks[8], ks[9], groups)
    w_conv = jax.random.normal(ks[10], (channel2, groups), jnp.float32) * 0.3
    s_bn2, b_bn2 = folded_bn(ks[11], ks[12], ks[13], ks[14], channel2)
    return dict(width=width,
                w_idn=w_idn, s_idn=s_idn, b_idn=b_idn,
                w_attn=w_attn, s_bn1=s_bn1, b_bn1=b_bn1,
                w_conv=w_conv, s_bn2=s_bn2, b_bn2=b_bn2)


def spe_reference(x, params):
    """Pure-JAX reference mirroring the PyTorch forward (for validation)."""
    B, C1, H, W = x.shape
    width = params["width"]
    groups = width // 3
    HW = H * W
    hi = jax.lax.Precision.HIGHEST

    xf = x.reshape(B, C1, HW)
    idn = jnp.einsum("oc,bcp->bop", params["w_idn"], xf, precision=hi)
    idn = idn * params["s_idn"][None] + params["b_idn"][None]

    xw = x[:, :width]
    win = xw.reshape(B, width, H // 4, 4, W // 4, 4)
    xq = win.max(axis=(3, 5)).reshape(B, groups, 3, HW // 16)
    xk = win.mean(axis=(3, 5)).reshape(B, groups, 3, HW // 16)
    xv = xw.reshape(B, groups, 3, HW)
    attn = jnp.einsum("bgip,bgjp->bgij", xq, xk, precision=hi) * (4.0 / H)
    s = jnp.einsum("gi,bgij->bgj", params["w_attn"], attn, precision=hi)
    p = jax.nn.softmax(s, axis=-1)
    out = jnp.einsum("bgi,bgip->bgp", p, xv, precision=hi)
    out = out * params["s_bn1"][None] + params["b_bn1"][None]
    out = jnp.maximum(out, 0.0)
    out = jnp.einsum("og,bgp->bop", params["w_conv"], out, precision=hi)
    out = out * params["s_bn2"][None] + params["b_bn2"][None]
    return jnp.maximum(idn + out, 0.0).reshape(B, -1, H, W)


if __name__ == "__main__":
    key = jax.random.PRNGKey(0)
    kx, kp = jax.random.split(key)

    # Spe(channel1=7, channel2=8): width = 6, groups = 2
    B, C1, C2, H, W = 2, 7, 8, 16, 16
    x = jax.random.normal(kx, (B, C1, H, W), jnp.float32)
    params = make_params(kp, C1, C2)

    y = jax.block_until_ready(spe_forward(x, params))

    y_ref = spe_reference(x, params)
    np.testing.assert_allclose(np.asarray(y), np.asarray(y_ref),
                               rtol=1e-4, atol=1e-4)
    print("KERNEL_OK")
</pallas_src>

<mosaic_0001>
module attributes {stable_mosaic.version = 11 : i64} {
  func.func @spe_kernel(%arg0: i32, %arg1: memref<7x512xf32, #tpu.memory_space<vmem>>, %arg2: memref<6x2x16xf32, #tpu.memory_space<vmem>>, %arg3: memref<6x2x16xf32, #tpu.memory_space<vmem>>, %arg4: memref<2x512xf32, #tpu.memory_space<vmem>>, %arg5: memref<8x7xf32, #tpu.memory_space<vmem>>, %arg6: memref<8x1xf32, #tpu.memory_space<vmem>>, %arg7: memref<8x1xf32, #tpu.memory_space<vmem>>, %arg8: memref<6x1x1xf32, #tpu.memory_space<vmem>>, %arg9: memref<2x1xf32, #tpu.memory_space<vmem>>, %arg10: memref<2x1xf32, #tpu.memory_space<vmem>>, %arg11: memref<8x2xf32, #tpu.memory_space<vmem>>, %arg12: memref<8x1xf32, #tpu.memory_space<vmem>>, %arg13: memref<8x1xf32, #tpu.memory_space<vmem>>, %arg14: memref<8x512xf32, #tpu.memory_space<vmem>>) attributes {dimension_semantics = [#tpu.dimension_semantics<parallel>], iteration_bounds = array<i64: 1>, scalar_prefetch = 0 : i64, scratch_operands = 0 : i64, tpu.core_type = #tpu.core_type<tc>, window_params = [{transform_indices = @transform_0, window_bounds = array<i64: 7, 512>}, {transform_indices = @transform_1, window_bounds = array<i64: 6, 2, 16>}, {transform_indices = @transform_2, window_bounds = array<i64: 6, 2, 16>}, {pipeline_mode = #tpu.pipeline_mode<synchronous>, transform_indices = @transform_3, window_bounds = array<i64: 2, 512>}, {pipeline_mode = #tpu.pipeline_mode<synchronous>, transform_indices = @transform_4, window_bounds = array<i64: 8, 7>}, {pipeline_mode = #tpu.pipeline_mode<synchronous>, transform_indices = @transform_5, window_bounds = array<i64: 8, 1>}, {pipeline_mode = #tpu.pipeline_mode<synchronous>, transform_indices = @transform_6, window_bounds = array<i64: 8, 1>}, {pipeline_mode = #tpu.pipeline_mode<synchronous>, transform_indices = @transform_7, window_bounds = array<i64: 6, 1, 1>}, {pipeline_mode = #tpu.pipeline_mode<synchronous>, transform_indices = @transform_8, window_bounds = array<i64: 2, 1>}, {pipeline_mode = #tpu.pipeline_mode<synchronous>, transform_indices = @transform_9, window_bounds = array<i64: 2, 1>}, {pipeline_mode = #tpu.pipeline_mode<synchronous>, transform_indices = @transform_10, window_bounds = array<i64: 8, 2>}, {pipeline_mode = #tpu.pipeline_mode<synchronous>, transform_indices = @transform_11, window_bounds = array<i64: 8, 1>}, {pipeline_mode = #tpu.pipeline_mode<synchronous>, transform_indices = @transform_12, window_bounds = array<i64: 8, 1>}, {transform_indices = @transform_13, window_bounds = array<i64: 8, 512>}]} {
    %c0 = arith.constant 0 : index
    %c0_0 = arith.constant 0 : index
    %0 = vector.load %arg1[%c0, %c0_0] : memref<7x512xf32, #tpu.memory_space<vmem>>, vector<7x512xf32>
    %c0_1 = arith.constant 0 : index
    %c0_2 = arith.constant 0 : index
    %1 = vector.load %arg5[%c0_1, %c0_2] : memref<8x7xf32, #tpu.memory_space<vmem>>, vector<8x7xf32>
    %cst = arith.constant dense<0.000000e+00> : vector<8x512xf32>
    %2 = tpu.matmul %1, %0, %cst {dimension_numbers = #tpu.dot_dimension_numbers<[1], [0], [0], [1], [0, 0, 1, 1], [], []>, precision = #tpu.contract_precision<fp32>} : vector<8x7xf32>, vector<7x512xf32>, vector<8x512xf32> -> vector<8x512xf32>
    %c0_3 = arith.constant 0 : index
    %c0_4 = arith.constant 0 : index
    %3 = vector.load %arg6[%c0_3, %c0_4] : memref<8x1xf32, #tpu.memory_space<vmem>>, vector<8x1xf32>
    %4 = vector.broadcast %3 : vector<8x1xf32> to vector<8x512xf32>
    %5 = arith.mulf %2, %4 : vector<8x512xf32>
    %c0_5 = arith.constant 0 : index
    %c0_6 = arith.constant 0 : index
    %6 = vector.load %arg7[%c0_5, %c0_6] : memref<8x1xf32, #tpu.memory_space<vmem>>, vector<8x1xf32>
    %7 = vector.broadcast %6 : vector<8x1xf32> to vector<8x512xf32>
    %8 = arith.addf %5, %7 : vector<8x512xf32>
    %c0_7 = arith.constant 0 : index
    %c0_8 = arith.constant 0 : index
    %c0_9 = arith.constant 0 : index
    %9 = vector.load %arg2[%c0_7, %c0_8, %c0_9] : memref<6x2x16xf32, #tpu.memory_space<vmem>>, vector<6x2x16xf32>
    %c0_10 = arith.constant 0 : index
    %c0_11 = arith.constant 0 : index
    %c0_12 = arith.constant 0 : index
    %10 = vector.load %arg3[%c0_10, %c0_11, %c0_12] : memref<6x2x16xf32, #tpu.memory_space<vmem>>, vector<6x2x16xf32>
    %c0_13 = arith.constant 0 : index
    %c0_14 = arith.constant 0 : index
    %c0_15 = arith.constant 0 : index
    %11 = vector.load %arg8[%c0_13, %c0_14, %c0_15] : memref<6x1x1xf32, #tpu.memory_space<vmem>>, vector<6x1x1xf32>
    %12 = vector.broadcast %11 : vector<6x1x1xf32> to vector<6x2x16xf32>
    %13 = arith.mulf %9, %12 : vector<6x2x16xf32>
    %14 = vector.extract_strided_slice %13 {offsets = [0, 0, 0], sizes = [1, 2, 16], strides = [1, 1, 1]} : vector<6x2x16xf32> to vector<1x2x16xf32>
    %15 = vector.shape_cast %14 : vector<1x2x16xf32> to vector<2x16xf32>
    %16 = vector.extract_strided_slice %13 {offsets = [1, 0, 0], sizes = [1, 2, 16], strides = [1, 1, 1]} : vector<6x2x16xf32> to vector<1x2x16xf32>
    %17 = vector.shape_cast %16 : vector<1x2x16xf32> to vector<2x16xf32>
    %18 = arith.addf %15, %17 : vector<2x16xf32>
    %19 = vector.extract_strided_slice %13 {offsets = [2, 0, 0], sizes = [1, 2, 16], strides = [1, 1, 1]} : vector<6x2x16xf32> to vector<1x2x16xf32>
    %20 = vector.shape_cast %19 : vector<1x2x16xf32> to vector<2x16xf32>
    %21 = arith.addf %18, %20 : vector<2x16xf32>
    %22 = vector.extract_strided_slice %10 {offsets = [0, 0, 0], sizes = [1, 2, 16], strides = [1, 1, 1]} : vector<6x2x16xf32> to vector<1x2x16xf32>
    %23 = vector.shape_cast %22 : vector<1x2x16xf32> to vector<2x16xf32>
    %24 = arith.mulf %21, %23 : vector<2x16xf32>
    %cst_16 = arith.constant dense<0.000000e+00> : vector<2xf32>
    %25 = vector.multi_reduction <add>, %24, %cst_16 [1] : vector<2x16xf32> to vector<2xf32>
    %26 = vector.shape_cast %25 : vector<2xf32> to vector<2x1xf32>
    %cst_17 = arith.constant 2.500000e-01 : f32
    %27 = vector.broadcast %cst_17 : f32 to vector<2x1xf32>
    %28 = arith.mulf %27, %26 : vector<2x1xf32>
    %29 = vector.extract_strided_slice %10 {offsets = [1, 0, 0], sizes = [1, 2, 16], strides = [1, 1, 1]} : vector<6x2x16xf32> to vector<1x2x16xf32>
    %30 = vector.shape_cast %29 : vector<1x2x16xf32> to vector<2x16xf32>
    %31 = arith.mulf %21, %30 : vector<2x16xf32>
    %cst_18 = arith.constant dense<0.000000e+00> : vector<2xf32>
    %32 = vector.multi_reduction <add>, %31, %cst_18 [1] : vector<2x16xf32> to vector<2xf32>
    %33 = vector.shape_cast %32 : vector<2xf32> to vector<2x1xf32>
    %cst_19 = arith.constant 2.500000e-01 : f32
    %34 = vector.broadcast %cst_19 : f32 to vector<2x1xf32>
    %35 = arith.mulf %34, %33 : vector<2x1xf32>
    %36 = vector.extract_strided_slice %10 {offsets = [2, 0, 0], sizes = [1, 2, 16], strides = [1, 1, 1]} : vector<6x2x16xf32> to vector<1x2x16xf32>
    %37 = vector.shape_cast %36 : vector<1x2x16xf32> to vector<2x16xf32>
    %38 = arith.mulf %21, %37 : vector<2x16xf32>
    %cst_20 = arith.constant dense<0.000000e+00> : vector<2xf32>
    %39 = vector.multi_reduction <add>, %38, %cst_20 [1] : vector<2x16xf32> to vector<2xf32>
    %40 = vector.shape_cast %39 : vector<2xf32> to vector<2x1xf32>
    %cst_21 = arith.constant 2.500000e-01 : f32
    %41 = vector.broadcast %cst_21 : f32 to vector<2x1xf32>
    %42 = arith.mulf %41, %40 : vector<2x1xf32>
    %43 = arith.maximumf %28, %35 : vector<2x1xf32>
    %44 = arith.maximumf %43, %42 : vector<2x1xf32>
    %45 = arith.subf %28, %44 : vector<2x1xf32>
    %46 = math.exp %45 : vector<2x1xf32>
    %47 = arith.subf %35, %44 : vector<2x1xf32>
    %48 = math.exp %47 : vector<2x1xf32>
    %49 = arith.subf %42, %44 : vector<2x1xf32>
    %50 = math.exp %49 : vector<2x1xf32>
    %51 = arith.addf %46, %48 : vector<2x1xf32>
    %52 = arith.addf %51, %50 : vector<2x1xf32>
    %53 = arith.divf %46, %52 : vector<2x1xf32>
    %54 = arith.divf %48, %52 : vector<2x1xf32>
    %55 = arith.divf %50, %52 : vector<2x1xf32>
    %56 = vector.extract_strided_slice %13 {offsets = [3, 0, 0], sizes = [1, 2, 16], strides = [1, 1, 1]} : vector<6x2x16xf32> to vector<1x2x16xf32>
    %57 = vector.shape_cast %56 : vector<1x2x16xf32> to vector<2x16xf32>
    %58 = vector.extract_strided_slice %13 {offsets = [4, 0, 0], sizes = [1, 2, 16], strides = [1, 1, 1]} : vector<6x2x16xf32> to vector<1x2x16xf32>
    %59 = vector.shape_cast %58 : vector<1x2x16xf32> to vector<2x16xf32>
    %60 = arith.addf %57, %59 : vector<2x16xf32>
    %61 = vector.extract_strided_slice %13 {offsets = [5, 0, 0], sizes = [1, 2, 16], strides = [1, 1, 1]} : vector<6x2x16xf32> to vector<1x2x16xf32>
    %62 = vector.shape_cast %61 : vector<1x2x16xf32> to vector<2x16xf32>
    %63 = arith.addf %60, %62 : vector<2x16xf32>
    %64 = vector.extract_strided_slice %10 {offsets = [3, 0, 0], sizes = [1, 2, 16], strides = [1, 1, 1]} : vector<6x2x16xf32> to vector<1x2x16xf32>
    %65 = vector.shape_cast %64 : vector<1x2x16xf32> to vector<2x16xf32>
    %66 = arith.mulf %63, %65 : vector<2x16xf32>
    %cst_22 = arith.constant dense<0.000000e+00> : vector<2xf32>
    %67 = vector.multi_reduction <add>, %66, %cst_22 [1] : vector<2x16xf32> to vector<2xf32>
    %68 = vector.shape_cast %67 : vector<2xf32> to vector<2x1xf32>
    %cst_23 = arith.constant 2.500000e-01 : f32
    %69 = vector.broadcast %cst_23 : f32 to vector<2x1xf32>
    %70 = arith.mulf %69, %68 : vector<2x1xf32>
    %71 = vector.extract_strided_slice %10 {offsets = [4, 0, 0], sizes = [1, 2, 16], strides = [1, 1, 1]} : vector<6x2x16xf32> to vector<1x2x16xf32>
    %72 = vector.shape_cast %71 : vector<1x2x16xf32> to vector<2x16xf32>
    %73 = arith.mulf %63, %72 : vector<2x16xf32>
    %cst_24 = arith.constant dense<0.000000e+00> : vector<2xf32>
    %74 = vector.multi_reduction <add>, %73, %cst_24 [1] : vector<2x16xf32> to vector<2xf32>
    %75 = vector.shape_cast %74 : vector<2xf32> to vector<2x1xf32>
    %cst_25 = arith.constant 2.500000e-01 : f32
    %76 = vector.broadcast %cst_25 : f32 to vector<2x1xf32>
    %77 = arith.mulf %76, %75 : vector<2x1xf32>
    %78 = vector.extract_strided_slice %10 {offsets = [5, 0, 0], sizes = [1, 2, 16], strides = [1, 1, 1]} : vector<6x2x16xf32> to vector<1x2x16xf32>
    %79 = vector.shape_cast %78 : vector<1x2x16xf32> to vector<2x16xf32>
    %80 = arith.mulf %63, %79 : vector<2x16xf32>
    %cst_26 = arith.constant dense<0.000000e+00> : vector<2xf32>
    %81 = vector.multi_reduction <add>, %80, %cst_26 [1] : vector<2x16xf32> to vector<2xf32>
    %82 = vector.shape_cast %81 : vector<2xf32> to vector<2x1xf32>
    %cst_27 = arith.constant 2.500000e-01 : f32
    %83 = vector.broadcast %cst_27 : f32 to vector<2x1xf32>
    %84 = arith.mulf %83, %82 : vector<2x1xf32>
    %85 = arith.maximumf %70, %77 : vector<2x1xf32>
    %86 = arith.maximumf %85, %84 : vector<2x1xf32>
    %87 = arith.subf %70, %86 : vector<2x1xf32>
    %88 = math.exp %87 : vector<2x1xf32>
    %89 = arith.subf %77, %86 : vector<2x1xf32>
    %90 = math.exp %89 : vector<2x1xf32>
    %91 = arith.subf %84, %86 : vector<2x1xf32>
    %92 = math.exp %91 : vector<2x1xf32>
    %93 = arith.addf %88, %90 : vector<2x1xf32>
    %94 = arith.addf %93, %92 : vector<2x1xf32>
    %95 = arith.divf %88, %94 : vector<2x1xf32>
    %96 = arith.divf %90, %94 : vector<2x1xf32>
    %97 = arith.divf %92, %94 : vector<2x1xf32>
    %98 = tpu.concatenate %53, %54, %55, %95, %96, %97 in 1 : vector<2x1xf32>, vector<2x1xf32>, vector<2x1xf32>, vector<2x1xf32>, vector<2x1xf32>, vector<2x1xf32> -> vector<2x6xf32>
    %99 = tpu.transpose %98, [1, 0] : vector<2x6xf32> -> vector<6x2xf32>
    %c0_28 = arith.constant 0 : index
    %c0_29 = arith.constant 0 : index
    %100 = vector.load %arg4[%c0_28, %c0_29] : memref<2x512xf32, #tpu.memory_space<vmem>>, vector<2x512xf32>
    %cst_30 = arith.constant dense<0.000000e+00> : vector<6x512xf32>
    %101 = tpu.matmul %99, %100, %cst_30 {dimension_numbers = #tpu.dot_dimension_numbers<[1], [0], [0], [1], [0, 0, 1, 1], [], []>, precision = #tpu.contract_precision<fp32>} : vector<6x2xf32>, vector<2x512xf32>, vector<6x512xf32> -> vector<6x512xf32>
    %102 = vector.extract_strided_slice %0 {offsets = [0, 0], sizes = [6, 512], strides = [1, 1]} : vector<7x512xf32> to vector<6x512xf32>
    %103 = arith.mulf %101, %102 : vector<6x512xf32>
    %104 = vector.extract_strided_slice %103 {offsets = [0, 0], sizes = [3, 512], strides = [1, 1]} : vector<6x512xf32> to vector<3x512xf32>
    %cst_31 = arith.constant dense<0.000000e+00> : vector<512xf32>
    %105 = vector.multi_reduction <add>, %104, %cst_31 [0] : vector<3x512xf32> to vector<512xf32>
    %106 = vector.shape_cast %105 : vector<512xf32> to vector<1x512xf32>
    %107 = vector.extract_strided_slice %103 {offsets = [3, 0], sizes = [3, 512], strides = [1, 1]} : vector<6x512xf32> to vector<3x512xf32>
    %cst_32 = arith.constant dense<0.000000e+00> : vector<512xf32>
    %108 = vector.multi_reduction <add>, %107, %cst_32 [0] : vector<3x512xf32> to vector<512xf32>
    %109 = vector.shape_cast %108 : vector<512xf32> to vector<1x512xf32>
    %110 = tpu.concatenate %106, %109 in 0 : vector<1x512xf32>, vector<1x512xf32> -> vector<2x512xf32>
    %c0_33 = arith.constant 0 : index
    %c0_34 = arith.constant 0 : index
    %111 = vector.load %arg9[%c0_33, %c0_34] : memref<2x1xf32, #tpu.memory_space<vmem>>, vector<2x1xf32>
    %112 = vector.broadcast %111 : vector<2x1xf32> to vector<2x512xf32>
    %113 = arith.mulf %110, %112 : vector<2x512xf32>
    %c0_35 = arith.constant 0 : index
    %c0_36 = arith.constant 0 : index
    %114 = vector.load %arg10[%c0_35, %c0_36] : memref<2x1xf32, #tpu.memory_space<vmem>>, vector<2x1xf32>
    %115 = vector.broadcast %114 : vector<2x1xf32> to vector<2x512xf32>
    %116 = arith.addf %113, %115 : vector<2x512xf32>
    %cst_37 = arith.constant 0.000000e+00 : f32
    %117 = vector.broadcast %cst_37 : f32 to vector<2x512xf32>
    %118 = arith.maximumf %116, %117 : vector<2x512xf32>
    %c0_38 = arith.constant 0 : index
    %c0_39 = arith.constant 0 : index
    %119 = vector.load %arg11[%c0_38, %c0_39] : memref<8x2xf32, #tpu.memory_space<vmem>>, vector<8x2xf32>
    %cst_40 = arith.constant dense<0.000000e+00> : vector<8x512xf32>
    %120 = tpu.matmul %119, %118, %cst_40 {dimension_numbers = #tpu.dot_dimension_numbers<[1], [0], [0], [1], [0, 0, 1, 1], [], []>, precision = #tpu.contract_precision<fp32>} : vector<8x2xf32>, vector<2x512xf32>, vector<8x512xf32> -> vector<8x512xf32>
    %c0_41 = arith.constant 0 : index
    %c0_42 = arith.constant 0 : index
    %121 = vector.load %arg12[%c0_41, %c0_42] : memref<8x1xf32, #tpu.memory_space<vmem>>, vector<8x1xf32>
    %122 = vector.broadcast %121 : vector<8x1xf32> to vector<8x512xf32>
    %123 = arith.mulf %120, %122 : vector<8x512xf32>
    %c0_43 = arith.constant 0 : index
    %c0_44 = arith.constant 0 : index
    %124 = vector.load %arg13[%c0_43, %c0_44] : memref<8x1xf32, #tpu.memory_space<vmem>>, vector<8x1xf32>
    %125 = vector.broadcast %124 : vector<8x1xf32> to vector<8x512xf32>
    %126 = arith.addf %123, %125 : vector<8x512xf32>
    %127 = arith.addf %8, %126 : vector<8x512xf32>
    %cst_45 = arith.constant 0.000000e+00 : f32
    %128 = vector.broadcast %cst_45 : f32 to vector<8x512xf32>
    %129 = arith.maximumf %127, %128 : vector<8x512xf32>
    %c0_46 = arith.constant 0 : index
    %c0_47 = arith.constant 0 : index
    %130 = vector.load %arg14[%c0_46, %c0_47] : memref<8x512xf32, #tpu.memory_space<vmem>>, vector<8x512xf32>
    tpu.vector_store %arg14[%c0_46, %c0_47], %129 {strides = array<i32>} : memref<8x512xf32, #tpu.memory_space<vmem>>, vector<8x512xf32>,
    return
  }
  func.func @transform_0(%arg0: i32) -> (i32, i32) {
    %c0_i32 = arith.constant 0 : i32
    %c0_i32_0 = arith.constant 0 : i32
    return %c0_i32, %arg0 : i32, i32
  }
  func.func @transform_1(%arg0: i32) -> (i32, i32, i32) {
    %c0_i32 = arith.constant 0 : i32
    %c0_i32_0 = arith.constant 0 : i32
    %c0_i32_1 = arith.constant 0 : i32
    return %c0_i32, %arg0, %c0_i32_0 : i32, i32, i32
  }
  func.func @transform_2(%arg0: i32) -> (i32, i32, i32) {
    %c0_i32 = arith.constant 0 : i32
    %c0_i32_0 = arith.constant 0 : i32
    %c0_i32_1 = arith.constant 0 : i32
    return %c0_i32, %arg0, %c0_i32_0 : i32, i32, i32
  }
  func.func @transform_3(%arg0: i32) -> (i32, i32) {
    %c0_i32 = arith.constant 0 : i32
    %c0_i32_0 = arith.constant 0 : i32
    %c0_i32_1 = arith.constant 0 : i32
    return %c0_i32, %c0_i32_0 : i32, i32
  }
  func.func @transform_4(%arg0: i32) -> (i32, i32) {
    %c0_i32 = arith.constant 0 : i32
    %c0_i32_0 = arith.constant 0 : i32
    %c0_i32_1 = arith.constant 0 : i32
    return %c0_i32, %c0_i32_0 : i32, i32
  }
  func.func @transform_5(%arg0: i32) -> (i32, i32) {
    %c0_i32 = arith.constant 0 : i32
    %c0_i32_0 = arith.constant 0 : i32
    %c0_i32_1 = arith.constant 0 : i32
    return %c0_i32, %c0_i32_0 : i32, i32
  }
  func.func @transform_6(%arg0: i32) -> (i32, i32) {
    %c0_i32 = arith.constant 0 : i32
    %c0_i32_0 = arith.constant 0 : i32
    %c0_i32_1 = arith.constant 0 : i32
    return %c0_i32, %c0_i32_0 : i32, i32
  }
  func.func @transform_7(%arg0: i32) -> (i32, i32, i32) {
    %c0_i32 = arith.constant 0 : i32
    %c0_i32_0 = arith.constant 0 : i32
    %c0_i32_1 = arith.constant 0 : i32
    %c0_i32_2 = arith.constant 0 : i32
    return %c0_i32, %c0_i32_0, %c0_i32_1 : i32, i32, i32
  }
  func.func @transform_8(%arg0: i32) -> (i32, i32) {
    %c0_i32 = arith.constant 0 : i32
    %c0_i32_0 = arith.constant 0 : i32
    %c0_i32_1 = arith.constant 0 : i32
    return %c0_i32, %c0_i32_0 : i32, i32
  }
  func.func @transform_9(%arg0: i32) -> (i32, i32) {
    %c0_i32 = arith.constant 0 : i32
    %c0_i32_0 = arith.constant 0 : i32
    %c0_i32_1 = arith.constant 0 : i32
    return %c0_i32, %c0_i32_0 : i32, i32
  }
  func.func @transform_10(%arg0: i32) -> (i32, i32) {
    %c0_i32 = arith.constant 0 : i32
    %c0_i32_0 = arith.constant 0 : i32
    %c0_i32_1 = arith.constant 0 : i32
    return %c0_i32, %c0_i32_0 : i32, i32
  }
  func.func @transform_11(%arg0: i32) -> (i32, i32) {
    %c0_i32 = arith.constant 0 : i32
    %c0_i32_0 = arith.constant 0 : i32
    %c0_i32_1 = arith.constant 0 : i32
    return %c0_i32, %c0_i32_0 : i32, i32
  }
  func.func @transform_12(%arg0: i32) -> (i32, i32) {
    %c0_i32 = arith.constant 0 : i32
    %c0_i32_0 = arith.constant 0 : i32
    %c0_i32_1 = arith.constant 0 : i32
    return %c0_i32, %c0_i32_0 : i32, i32
  }
  func.func @transform_13(%arg0: i32) -> (i32, i32) {
    %c0_i32 = arith.constant 0 : i32
    %c0_i32_0 = arith.constant 0 : i32
    return %c0_i32, %arg0 : i32, i32
  }
}

</mosaic_0001>

<bundles_post_ra>
// kernel: tpu_custom_call.1
= control target key start
LH: loop header
LB: loop body
LE: loop exit
PB: predicated region body
PF: predicated region fallthrough
CT: control target
= control target key end

     0   :  { %18 = vsyncpa [#allocation3], 0  ;;  %s3679_s0 = inlined_call_operand.vmem [shape: f32[7,512], index: 0, kind: input, shape index: {}]   ;;  %s3680_s1 = inlined_call_operand.vmem [shape: f32[6,2,16], index: 1, kind: input, shape index: {}]   ;;  %s3681_s2 = inlined_call_operand.vmem [shape: f32[6,2,16], index: 2, kind: input, shape index: {}]   ;;  %s3682_s3 = inlined_call_operand.vmem [shape: f32[2,512], index: 3, kind: input, shape index: {}]   ;;  %s3683_s4 = inlined_call_operand.hbm [shape: f32[8,7], index: 4, kind: input, shape index: {}]   ;;  %s3684_s5 = inlined_call_operand.vmem [shape: f32[8,1], index: 5, kind: input, shape index: {}]   ;;  %s3685_s6 = inlined_call_operand.vmem [shape: f32[8,1], index: 6, kind: input, shape index: {}]   ;;  %s3686_s7 = inlined_call_operand.vmem [shape: f32[6,1,1], index: 7, kind: input, shape index: {}]   ;;  %s3687_s8 = inlined_call_operand.vmem [shape: f32[2,1], index: 8, kind: input, shape index: {}]   ;;  %s3688_s9 = inlined_call_operand.vmem [shape: f32[2,1], index: 9, kind: input, shape index: {}]   ;;  %s3689_s10 = inlined_call_operand.vmem [shape: f32[8,2], index: 10, kind: input, shape index: {}]   ;;  %s3690_s11 = inlined_call_operand.vmem [shape: f32[8,1], index: 11, kind: input, shape index: {}]   ;;  %s3691_s12 = inlined_call_operand.vmem [shape: f32[8,1], index: 12, kind: input, shape index: {}]   ;;  %s3692_s13 = inlined_call_operand.hbm [shape: f32[8,512], index: 13, kind: output, shape index: {}]  }
   0x1   :  { %19 = vsyncpa [#allocation4], 0  ;;  %s3348_s25 = smov [#allocation2]  }
   0x2   :  { %s34_s26 = sshll.u32 %s3348_s25, 4  ;;  %s35_s26 = int_to_ptr.vmem [resolvable:$true] %s34_s26 }
   0x3   :  { %s3312_s27 = scalar_lea.vmem %s35_s26, 128  ;;  %p3317_p1 = scmp.lt.s32.totalorder %s35_s26, %s35_s26 }
   0x4   :  { %p3313_p0 = scmp.ne.s32.totalorder %s35_s26, %s3312_s27  ;;  %p3318_p2 = scmp.lt.s32.totalorder %s3312_s27, %s3312_s27 }
   0x6   :  { %p3319_p3 = por %p3318_p2, %p3317_p1 }
   0x8   :  { %p3320_p4 = pnand %p3319_p3, %p3313_p0 }
   0xa   :  { %3323 = shalt.err (!%p3320_p4)
}
   0xb   :  { %37 = dma.hbm_to_vmem [thread:$0]  %s3683_s4, 128, %s35_s26, [#allocation3]  }
   0xc   :  { %3344 = dma.done.wait [#allocation3], 128  }
   0xd   :  { %3345 = vsyncadd [#allocation3], 4294967168  ;;  %v3349_v0 = vmov 0   ;;  %v3350_v1 = vmov 0.0   ;;  %v3276_v2 = vld [vmem:[%s3686_s7 + $0x2] ss:$0 sm:$0xff] }
   0xe   :  { %3286 = vset.pattern.permute.xlu1 %v3349_v0  ;;  %3285 = vset.pattern.permute.xlu0 %v3349_v0  ;;  %v3274_v3 = vld [vmem:[%s3686_s7] ss:$0 sm:$0xff]  ;;  %vm66_vm0 = vcmask 1046528   ;;  %vm62_vm1 = vcmask 56320   ;;  %v3277_v4 = vld [vmem:[%s3686_s7 + $0x3] ss:$0 sm:$0xff] }
   0xf   :  { %145 = vmatprep.mubr.f32.mxu0 %v3350_v1  ;;  %231 = vmatprep.mubr.f32.mxu1 %v3350_v1  ;;  %v3275_v5 = vld [vmem:[%s3686_s7 + $0x1] ss:$0 sm:$0xff]  ;;  %v3443_v6 = vld [vmem:[%s3679_s0 + $0x8] sm:$0x7f]  ;;  %v3457_v12 = vld [vmem:[%s3679_s0 + $0x18] sm:$0x7f] }
  0x10   :  { %1086 = vperm.xlu1 %3286, %v3276_v2   ;;  %1078 = vperm.xlu0 %3285, %v3274_v3   ;;  %v3448_v7 = vld [vmem:[%s3679_s0] sm:$0x7f]  ;;  %v71_v9 = vsel %vm66_vm0, %v3443_v6, 0  ;;  %v77_v16 = vsel %vm66_vm0, %v3457_v12, 0  ;;  %v3466_v17 = vld [vmem:[%s3679_s0 + $0x10] sm:$0x7f] }
  0x11   :  { %v61_v8 = vld [vmem:[#allocation2] sm:$0xff]  ;;  %v68_v10 = vsel %vm66_vm0, %v3448_v7, 0  ;;  %v109_v13 = vand.u32 4294901760, %v71_v9  ;;  %v3468_v18 = vand.u32 4294901760, %v77_v16  ;;  %v74_v19 = vsel %vm66_vm0, %v3466_v17, 0 }
  0x12   :  { %v64_v11 = vsel %vm62_vm1, %v61_v8, 0  ;;  %v111_v14 = vand.u32 4294901760, %v68_v10  ;;  %v3279_v20 = vld [vmem:[%s3686_s7 + $0x5] ss:$0 sm:$0xff]  ;;  %v3278_v21 = vld [vmem:[%s3686_s7 + $0x4] ss:$0 sm:$0xff] }
  0x13   :  { %v3459_v15 = vand.u32 4294901760, %v64_v11  ;;  %110 = vmatprep.subr.mxu0 %v109_v13  ;;  %v188_v23 = vsub.f32 %v71_v9, %v109_v13  ;;  %v576_v25 = vand.u32 4294901760, %v74_v19  ;;  %v653_v29 = vsub.f32 %v77_v16, %v3468_v18  ;;  %v1031_v45 = vld [vmem:[%s3680_s1 + $0x4] sm:$0x3]  ;;  %v1029_v46 = vld [vmem:[%s3680_s1] sm:$0x3] }
  0x14   :  { %1090 = vperm.xlu1 %3286, %v3277_v4   ;;  %1082 = vperm.xlu0 %3285, %v3275_v5   ;;  %v194_v24 = vsub.f32 %v68_v10, %v111_v14  ;;  %v1030_v47 = vld [vmem:[%s3680_s1 + $0x2] sm:$0x3]  ;;  %v1032_v53 = vld [vmem:[%s3680_s1 + $0x6] sm:$0x3]  ;;  %v1033_v54 = vld [vmem:[%s3680_s1 + $0x8] sm:$0x3] }
  0x15   :  { %v147_v22 = vsub.f32 %v64_v11, %v3459_v15  ;;  %112 = vmatpush1.msra.mxu0 %v111_v14  ;;  %v189_v27 = vand.u32 4294901760, %v188_v23  ;;  %v659_v33 = vsub.f32 %v74_v19, %v576_v25  ;;  %v654_v37 = vand.u32 4294901760, %v653_v29  ;;  %v1034_v57 = vld [vmem:[%s3680_s1 + $0xa] sm:$0x3]  ;;  %v1036_v59 = vld [vmem:[%s3681_s2 + $0x2] sm:$0x3] }
  0x16   :  { %v195_v28 = vand.u32 4294901760, %v194_v24  ;;  %271 = vmatprep.subr.mxu0 %v188_v23  ;;  %v1035_v60 = vld [vmem:[%s3681_s2] sm:$0x3]  ;;  %vm1110_vm2 = vcmask 123904   ;;  %v1037_v0 = vld [vmem:[%s3681_s2 + $0x4] sm:$0x3] }
  0x17   :  { %v148_v26 = vand.u32 4294901760, %v147_v22  ;;  %v190_v31 = vsub.f32 %v188_v23, %v189_v27  ;;  %v660_v38 = vand.u32 4294901760, %v659_v33  ;;  %v655_v39 = vsub.f32 %v653_v29, %v654_v37  ;;  %v1039_v8 = vld [vmem:[%s3681_s2 + $0x8] sm:$0x3] }
  0x18   :  { %1098 = vperm.xlu1 %3286, %v3279_v20   ;;  %1094 = vperm.xlu0 %3285, %v3278_v21   ;;  %v196_v32 = vsub.f32 %v194_v24, %v195_v28  ;;  %v1040_v20 = vld [vmem:[%s3681_s2 + $0xa] sm:$0x3]  ;;  %vm1240_vm3 = vcmask 1041408   ;;  %vm1176_vm4 = vcmask 7168   ;;  %vm1178_vm5 = vcmask 15360  }
  0x19   :  { %v149_v30 = vsub.f32 %v147_v22, %v148_v26  ;;  %v191_v35 = vand.u32 4294901760, %v190_v31  ;;  %v661_v40 = vsub.f32 %v659_v33, %v660_v38  ;;  %v656_v41 = vand.u32 4294901760, %v655_v39 }
  0x1a   :  { %v197_v36 = vand.u32 4294901760, %v196_v32  ;;  %vm1180_vm6 = vcmask 23552   ;;  %vm1182_vm7 = vcmask 31744   ;;  %vm1184_vm8 = vcmask 39936  }
  0x1b   :  { %v150_v34 = vand.u32 4294901760, %v149_v30  ;;  %192 = vmatprep.subr.mxu1 %v191_v35  ;;  %v662_v42 = vand.u32 4294901760, %v661_v40  ;;  %vm2183_vm9 = vcmask 1042432   ;;  %vm2252_vm10 = vcmask 1040384  }
  0x1c   :  { %198 = vmatpush1.msra.mxu1 %v197_v36 }
  0x1d   :  { %151 = vmatmul.mubr.f32.vlgmr.msra.gmra.mxu0 %v150_v34  ;;  %233 = vmatmul.mubr.f32.vlgmr.msra.gmra.mxu1 %v3459_v15 }
  0x1e   :  { %274 = vmatpush1.msra.mxu0 %v194_v24  ;;  %307 = vmatprep.mubr.f32.mxu0 %v3350_v1  ;;  %v2257_v24 = vld [vmem:[%s3687_s8] sm:$0x3] }
  0x1f   :  { %347 = vmatprep.subr.mxu1 %v109_v13  ;;  %382 = vmatprep.mubr.f32.mxu1 %v3350_v1 }
  0x20   :  { %349 = vmatpush1.msra.mxu1 %v111_v14  ;;  %425 = vmatprep.subr.mxu0 %v189_v27  ;;  %v3227_v27 = vld [vmem:[%s3690_s11] sm:$0xff] }
  0x21   :  { %310 = vmatmul.mubr.f32.vlgmr.msra.gmra.mxu0 %v147_v22  ;;  %386 = vmatmul.mubr.f32.vlgmr.msra.gmra.mxu1 %v148_v26 }
  0x22   :  { %462 = vmatprep.mubr.f32.mxu0 %v3350_v1  ;;  %429 = vmatpush1.msra.mxu0 %v195_v28  ;;  %v1019_v28 = vld [vmem:[%s3685_s6] sm:$0xff] }
  0x23   :  { %501 = vmatprep.subr.mxu1 %v109_v13  ;;  %536 = vmatprep.mubr.f32.mxu1 %v3350_v1 }
  0x24   :  { %503 = vmatpush1.msra.mxu1 %v111_v14  ;;  %575 = vmatprep.subr.mxu0 %v3468_v18  ;;  %v1038_v14 = vld [vmem:[%s3681_s2 + $0x6] sm:$0x3] }
  0x25   :  { %464 = vmatmul.mubr.f32.vlgmr.msra.gmra.mxu0 %v3459_v15  ;;  %538 = vmatmul.mubr.f32.vlgmr.msra.gmra.mxu1 %v3459_v15 }
  0x26   :  { %610 = vmatprep.mubr.f32.mxu0 %v3350_v1  ;;  %577 = vmatpush1.msra.mxu0 %v576_v25 }
  0x27   :  { %657 = vmatprep.subr.mxu1 %v656_v41  ;;  %696 = vmatprep.mubr.f32.mxu1 %v3350_v1 }
  0x28   :  { %663 = vmatpush1.msra.mxu1 %v662_v42  ;;  %736 = vmatprep.subr.mxu0 %v653_v29  ;;  %v3237_v29 = vld [vmem:[%s3691_s12] sm:$0xff] }
  0x29   :  { %616 = vmatmul.mubr.f32.vlgmr.msra.gmra.mxu0 %v150_v34  ;;  %698 = vmatmul.mubr.f32.vlgmr.msra.gmra.mxu1 %v3459_v15 }
  0x2a   :  { %772 = vmatprep.mubr.f32.mxu0 %v3350_v1  ;;  %739 = vmatpush1.msra.mxu0 %v659_v33 }
  0x2b   :  { %812 = vmatprep.subr.mxu1 %v3468_v18  ;;  %847 = vmatprep.mubr.f32.mxu1 %v3350_v1 }
  0x2c   :  { %814 = vmatpush1.msra.mxu1 %v576_v25  ;;  %890 = vmatprep.subr.mxu0 %v654_v37 }
  0x2d   :  { %775 = vmatmul.mubr.f32.vlgmr.msra.gmra.mxu0 %v147_v22  ;;  %851 = vmatmul.mubr.f32.vlgmr.msra.gmra.mxu1 %v148_v26  ;;  %v1009_v26 = vld [vmem:[%s3684_s5] sm:$0xff] }
  0x2e   :  { %927 = vmatprep.mubr.f32.mxu0 %v3350_v1  ;;  %894 = vmatpush1.msra.mxu0 %v660_v38 }
  0x2f   :  { %966 = vmatprep.subr.mxu1 %v3468_v18  ;;  %1001 = vmatprep.mubr.f32.mxu1 %v3350_v1 }
  0x30   :  { %968 = vmatpush1.msra.mxu1 %v576_v25  ;;  %v2267_v25 = vld [vmem:[%s3688_s9] sm:$0x3] }
  0x31   :  { %929 = vmatmul.mubr.f32.vlgmr.msra.gmra.mxu0 %v3459_v15  ;;  %1003 = vmatmul.mubr.f32.vlgmr.msra.gmra.mxu1 %v3459_v15 }
  0x32   :  { %1315 = vmatprep.mubr.f32.mxu0 %v3350_v1  ;;  %1401 = vmatprep.mubr.f32.mxu1 %v3350_v1 }
  0x8b   :  { %v1087_v43 = vpop.permute.xlu1 %1086  ;;  %v1079_v44 = vpop.permute.xlu0 %1078 }
  0x8c   :  { %v1103_v50 = vmul.f32 %v1087_v43, %v1031_v45  ;;  %v1101_v51 = vmul.f32 %v1079_v44, %v1029_v46 }
  0x8f   :  { %v1091_v48 = vpop.permute.xlu1 %1090  ;;  %v1083_v49 = vpop.permute.xlu0 %1082 }
  0x90   :  { %v1102_v52 = vmul.f32 %v1083_v49, %v1030_v47  ;;  %v1104_v61 = vmul.f32 %v1091_v48, %v1032_v53 }
  0x92   :  { %v1107_v55 = vadd.f32 %v1102_v52, %v1101_v51 }
  0x93   :  { %v1099_v56 = vpop.permute.xlu1 %1098  ;;  %v1095_v58 = vpop.permute.xlu0 %1094 }
  0x94   :  { %v1108_v62 = vadd.f32 %v1107_v55, %v1103_v50  ;;  %v1105_v63 = vmul.f32 %v1095_v58, %v1033_v54  ;;  %v1106_v2 = vmul.f32 %v1099_v56, %v1034_v57 }
  0x96   :  { %v1142_v3 = vadd.f32 %v1105_v63, %v1104_v61  ;;  %v1115_v4 = vmul.f32 %v1108_v62, %v1036_v59  ;;  %v1109_v5 = vmul.f32 %v1108_v62, %v1035_v60  ;;  %v1120_v13 = vmul.f32 %v1108_v62, %v1037_v0 }
  0x98   :  { %v1143_v9 = vadd.f32 %v1142_v3, %v1106_v2  ;;  %v1116_v10 = vsel %vm1110_vm2, %v1115_v4, 0.0  ;;  %v1111_v11 = vsel %vm1110_vm2, %v1109_v5, 0.0  ;;  %v1121_v18 = vsel %vm1110_vm2, %v1120_v13, 0.0 }
  0x99   :  { %1117 = vadd.xlane.f32.xlu1 %v1116_v10  ;;  %1112 = vadd.xlane.f32.xlu0 %v1111_v11 }
  0x9a   :  { %v1149_v15 = vmul.f32 %v1143_v9, %v1039_v8  ;;  %v1144_v19 = vmul.f32 %v1143_v9, %v1038_v14  ;;  %v1154_v22 = vmul.f32 %v1143_v9, %v1040_v20 }
  0x9c   :  { %v1150_v16 = vsel %vm1110_vm2, %v1149_v15, 0.0  ;;  %v1145_v21 = vsel %vm1110_vm2, %v1144_v19, 0.0  ;;  %v1155_v23 = vsel %vm1110_vm2, %v1154_v22, 0.0 }
  0x9d   :  { %1151 = vadd.xlane.f32.xlu1 %v1150_v16  ;;  %1122 = vadd.xlane.f32.xlu0 %v1121_v18 }
  0xa1   :  { %1146 = vadd.xlane.f32.xlu0 %v1145_v21 }
  0xa5   :  { %1156 = vadd.xlane.f32.xlu0 %v1155_v23 }
  0xbb   :  { %2260 = vperm.xlu0 %3285, %v2257_v24  }
  0xbf   :  { %2270 = vperm.xlu0 %3285, %v2267_v25  }
  0xc3   :  { %1012 = vperm.xlu0 %3285, %v1009_v26  }
  0xc7   :  { %3230 = vperm.xlu0 %3285, %v3227_v27  }
  0xcb   :  { %1022 = vperm.xlu0 %3285, %v1019_v28  }
  0xcf   :  { %3240 = vperm.xlu0 %3285, %v3237_v29  }
  0xdd   :  { %v152_v30 = vpop.f32.mrf.mxu0  ;;  %v234_v32 = vpop.f32.mrf.mxu1 }
  0xde   :  { %v235_v33 = vadd.f32 %v234_v32, %v152_v30 }
  0xdf   :  { %v154_v31 = vpop.f32.mrf.mxu0  ;;  %v236_v34 = vpop.f32.mrf.mxu1 }
  0xe0   :  { %v237_v36 = vadd.f32 %v236_v34, %v154_v31 }
  0xe1   :  { %v311_v35 = vpop.f32.mrf.mxu0  ;;  %v387_v39 = vpop.f32.mrf.mxu1 }
  0xe2   :  { %v312_v37 = vadd.f32 %v311_v35, %v235_v33 }
  0xe3   :  { %v313_v38 = vpop.f32.mrf.mxu0  ;;  %v389_v42 = vpop.f32.mrf.mxu1 }
  0xe4   :  { %v314_v40 = vadd.f32 %v313_v38, %v237_v36  ;;  %v388_v41 = vadd.f32 %v387_v39, %v312_v37 }
  0xe5   :  { %v465_v43 = vpop.f32.mrf.mxu0  ;;  %v539_v47 = vpop.f32.mrf.mxu1 }
  0xe6   :  { %v390_v44 = vadd.f32 %v389_v42, %v314_v40  ;;  %v466_v45 = vadd.f32 %v465_v43, %v388_v41 }
  0xe7   :  { %v467_v46 = vpop.f32.mrf.mxu0  ;;  %v541_v50 = vpop.f32.mrf.mxu1 }
  0xe8   :  { %v468_v48 = vadd.f32 %v467_v46, %v390_v44  ;;  %v3561_v49 = vadd.f32 %v539_v47, %v466_v45 }
  0xe9   :  { %v617_v51 = vpop.f32.mrf.mxu0  ;;  %v699_v54 = vpop.f32.mrf.mxu1 }
  0xea   :  { %v3563_v52 = vadd.f32 %v541_v50, %v468_v48  ;;  %v700_v55 = vadd.f32 %v699_v54, %v617_v51  ;;  %v3351_v50 = vmov 1983009808  }
  0xeb   :  { %v619_v53 = vpop.f32.mrf.mxu0  ;;  %v701_v56 = vpop.f32.mrf.mxu1  ;;  %v1222_v51 = vunpack.c.l.s4 %v3351_v50 }
  0xec   :  { %v702_v58 = vadd.f32 %v701_v56, %v619_v53  ;;  %v1224_v53 = vlaneseq  ;;  %v1218_v56 = vld [vmem:[%s3682_s3] sm:$0xff] }
  0xed   :  { %v776_v57 = vpop.f32.mrf.mxu0  ;;  %v852_v61 = vpop.f32.mrf.mxu1  ;;  %v1223_v54 = vunpack.c.0.s8 %v1222_v51 }
  0xee   :  { %v777_v59 = vadd.f32 %v776_v57, %v700_v55  ;;  %v1225_v55 = vshrl.u32 %v1224_v53, 7 }
  0xef   :  { %v778_v60 = vpop.f32.mrf.mxu0  ;;  %v854_v0 = vpop.f32.mrf.mxu1 }
  0xf0   :  { %v779_v62 = vadd.f32 %v778_v60, %v702_v58  ;;  %v853_v63 = vadd.f32 %v852_v61, %v777_v59  ;;  %v1226_v57 = vsub.s32 %v1223_v54, %v1225_v55 }
  0xf1   :  { %v930_v2 = vpop.f32.mrf.mxu0  ;;  %v1004_v5 = vpop.f32.mrf.mxu1 }
  0xf2   :  { %v3565_v3 = vadd.f32 %v854_v0, %v779_v62  ;;  %v931_v4 = vadd.f32 %v930_v2, %v853_v63  ;;  %v1227_v58 = vrot.slane %v1218_v56, %v1226_v57 }
  0xf3   :  { %v3600_v51 = vpop.f32.mrf.mxu1 }
  0xf4   :  { %v3567_v8 = vadd.f32 %v1004_v5, %v931_v4  ;;  %v1235_v60 = vcombine.high %v1227_v58, %v1227_v58  ;;  %v1241_v0 = vsel %vm1240_vm3, %v1227_v58, 0 }
  0xf5   :  { %v1281_v4 = vand.u32 4294901760, %v1241_v0 }
  0xf6   :  { %v1243_v63 = vsel %vm1240_vm3, %v1235_v60, 0 }
  0xf7   :  { %v1279_v2 = vand.u32 4294901760, %v1243_v63 }
  0xf9   :  { %1280 = vmatprep.subr.mxu0 %v1279_v2 }
  0xfa   :  { %1282 = vmatpush1.msra.mxu0 %v1281_v4 }
 0x122   :  { %v1118_v9 = vpop.xlane.xlu1 %1117  ;;  %v1113_v10 = vpop.xlane.xlu0 %1112 }
 0x123   :  { %v1119_v11 = vmul.f32 0.25, %v1118_v9  ;;  %v1114_v13 = vmul.f32 0.25, %v1113_v10  ;;  %v3574_v9 = vsub.f32 %v1243_v63, %v1279_v2  ;;  %v3576_v10 = vsub.f32 %v1241_v0, %v1281_v4 }
 0x125   :  { %v1125_v15 = vmax.f32 %v1114_v13, %v1119_v11  ;;  %1441 = vmatprep.subr.mxu0 %v3574_v9 }
 0x126   :  { %v1123_v14 = vpop.xlane.xlu0 %1122  ;;  %v1152_v19 = vpop.xlane.xlu1 %1151 }
 0x127   :  { %v1124_v16 = vmul.f32 0.25, %v1123_v14  ;;  %v1153_v25 = vmul.f32 0.25, %v1152_v19  ;;  %v1359_v14 = vand.u32 4294901760, %v3574_v9 }
 0x129   :  { %v1126_v18 = vmax.f32 %v1125_v15, %v1124_v16  ;;  %v1365_v15 = vand.u32 4294901760, %v3576_v10 }
 0x12a   :  { %v1147_v20 = vpop.xlane.xlu0 %1146 }
 0x12b   :  { %v1127_v21 = vsub.f32 %v1114_v13, %v1126_v18  ;;  %v1130_v22 = vsub.f32 %v1119_v11, %v1126_v18  ;;  %v1133_v23 = vsub.f32 %v1124_v16, %v1126_v18  ;;  %v1148_v24 = vmul.f32 0.25, %v1147_v20 }
 0x12c   :  { %v1220_v16 = vcombine.high %v1218_v56, %v1218_v56  ;;  %v3602_v56 = vpop.f32.mrf.mxu0 }
 0x12d   :  { %v1128_v26 = vmul.f32 1.442695, %v1127_v21  ;;  %v1131_v27 = vmul.f32 1.442695, %v1130_v22  ;;  %v1134_v28 = vmul.f32 1.442695, %v1133_v23  ;;  %v1159_v30 = vmax.f32 %v1148_v24, %v1153_v25 }
 0x12e   :  { %v1157_v29 = vpop.xlane.xlu0 %1156  ;;  %v1360_v21 = vsub.f32 %v3574_v9, %v1359_v14  ;;  %v1366_v22 = vsub.f32 %v3576_v10, %v1365_v15  ;;  %v1234_v23 = vrot.slane %v1220_v16, %v1226_v57 }
 0x12f   :  { %3288 = vpow2.f32 %v1128_v26  ;;  %v1158_v31 = vmul.f32 0.25, %v1157_v29 }
 0x130   :  { %3290 = vpow2.f32 %v1131_v27  ;;  %v1361_v27 = vand.u32 4294901760, %v1360_v21 }
 0x131   :  { %v1160_v32 = vmax.f32 %v1159_v30, %v1158_v31  ;;  %3292 = vpow2.f32 %v1134_v28  ;;  %v1367_v28 = vand.u32 4294901760, %v1366_v22  ;;  %v1236_v30 = vcombine.high %v1234_v23, %v1234_v23 }
 0x132   :  { %1362 = vmatprep.subr.mxu1 %v1361_v27 }
 0x133   :  { %v1161_v33 = vsub.f32 %v1148_v24, %v1160_v32  ;;  %v1164_v34 = vsub.f32 %v1153_v25, %v1160_v32  ;;  %v1167_v35 = vsub.f32 %v1158_v31, %v1160_v32  ;;  %1368 = vmatpush1.msra.mxu1 %v1367_v28  ;;  %v1247_v31 = vsel %vm1240_vm3, %v1236_v30, 0 }
 0x134   :  { %1517 = vmatprep.subr.mxu1 %v1279_v2  ;;  %v1744_v32 = vand.u32 4294901760, %v1247_v31 }
 0x135   :  { %v1162_v36 = vmul.f32 1.442695, %v1161_v33  ;;  %v1165_v37 = vmul.f32 1.442695, %v1164_v34  ;;  %v1168_v38 = vmul.f32 1.442695, %v1167_v35 }
 0x136   :  { %v1245_v33 = vsel %vm1240_vm3, %v1234_v23, 0  ;;  %v1823_v34 = vsub.f32 %v1247_v31, %v1744_v32 }
 0x137   :  { %3294 = vpow2.f32 %v1162_v36  ;;  %v1746_v35 = vand.u32 4294901760, %v1245_v33 }
 0x138   :  { %3296 = vpow2.f32 %v1165_v37  ;;  %v1824_v36 = vand.u32 4294901760, %v1823_v34 }
 0x139   :  { %3298 = vpow2.f32 %v1168_v38  ;;  %v1829_v37 = vsub.f32 %v1245_v33, %v1746_v35 }
 0x13c   :  { %v3289_v39 = vpop.eup %3288 }
 0x13d   :  { %v3291_v40 = vpop.eup %3290 }
 0x13e   :  { %v1136_v41 = vadd.f32 %v3291_v40, %v3289_v39  ;;  %v3293_v42 = vpop.eup %3292 }
 0x140   :  { %v1137_v43 = vadd.f32 %v3293_v42, %v1136_v41  ;;  %v1825_v41 = vsub.f32 %v1823_v34, %v1824_v36 }
 0x142   :  { %3300 = vrcp.f32 %v1137_v43 }
 0x144   :  { %v3295_v44 = vpop.eup %3294 }
 0x145   :  { %v3297_v45 = vpop.eup %3296 }
 0x146   :  { %v1170_v46 = vadd.f32 %v3297_v45, %v3295_v44  ;;  %v3299_v47 = vpop.eup %3298 }
 0x148   :  { %v1171_v48 = vadd.f32 %v3299_v47, %v1170_v46 }
 0x14a   :  { %3302 = vrcp.f32 %v1171_v48 }
 0x14f   :  { %v3301_v59 = vpop.eup %3300 }
 0x150   :  { %v1139_v61 = vmul.f32 %v3301_v59, %v3289_v39  ;;  %v1140_v62 = vmul.f32 %v3301_v59, %v3291_v40  ;;  %v1141_v5 = vmul.f32 %v3301_v59, %v3293_v42  ;;  %v1830_v42 = vand.u32 4294901760, %v1829_v37 }
 0x152   :  { %v1177_v11 = vsel %vm1176_vm4, %v1139_v61, %v1140_v62  ;;  %v1831_v46 = vsub.f32 %v1829_v37, %v1830_v42 }
 0x153   :  { %v1179_v20 = vsel %vm1178_vm5, %v1177_v11, %v1141_v5 }
 0x154   :  { %v1832_v50 = vand.u32 4294901760, %v1831_v46 }
 0x157   :  { %v3303_v13 = vpop.eup %3302 }
 0x158   :  { %v1173_v18 = vmul.f32 %v3303_v13, %v3295_v44  ;;  %v1174_v19 = vmul.f32 %v3303_v13, %v3297_v45  ;;  %v1175_v24 = vmul.f32 %v3303_v13, %v3299_v47  ;;  %v1826_v45 = vand.u32 4294901760, %v1825_v41 }
 0x15a   :  { %v1181_v25 = vsel %vm1180_vm6, %v1179_v20, %v1173_v18 }
 0x15b   :  { %v1183_v26 = vsel %vm1182_vm7, %v1181_v25, %v1174_v19  ;;  %v2281_v25 = vld [vmem:[%s3689_s10] sm:$0xff]  ;;  %s3352_s10 = smov [#allocation5]  }
 0x15c   :  { %v1185_v29 = vsel %vm1184_vm8, %v1183_v26, %v1175_v24  ;;  %s3265_s11 = sshll.u32 %s3352_s10, 4  ;;  %s3266_s11 = int_to_ptr.vmem [resolvable:$true] %s3265_s11 }
 0x15d   :  { %1186 = vxpose.xlu1.b32.start.end [1/1] (short) (narrow) %v1185_v29, 8  ;;  %s3324_s12 = scalar_lea.vmem %s3266_s11, 512  ;;  %p3329_p6 = scmp.lt.s32.totalorder %s3266_s11, %s3266_s11 }
 0x15e   :  { %p3325_p5 = scmp.ne.s32.totalorder %s3266_s11, %s3324_s12  ;;  %p3330_p7 = scmp.lt.s32.totalorder %s3324_s12, %s3324_s12 }
 0x160   :  { %p3331_p8 = por %p3330_p7, %p3329_p6 }
 0x162   :  { %p3332_p9 = pnand %p3331_p8, %p3325_p5 }
 0x1d9   :  { %v1202_v38 = vpop.trf.xlu1 }
 0x1da   :  { %v1238_v39 = vsel %vm1178_vm5, %v1202_v38, 0 }
 0x1db   :  { %v1316_v40 = vand.u32 4294901760, %v1238_v39 }
 0x1dd   :  { %v1317_v43 = vsub.f32 %v1238_v39, %v1316_v40  ;;  %1403 = vmatmul.mubr.f32.vlgmr.msra.gmra.mxu1 %v1316_v40 }
 0x1de   :  { %1519 = vmatpush1.msra.mxu1 %v1281_v4  ;;  %1552 = vmatprep.mubr.f32.mxu1 %v3350_v1 }
 0x1df   :  { %v1318_v44 = vand.u32 4294901760, %v1317_v43  ;;  %1671 = vmatprep.subr.mxu1 %v1279_v2 }
 0x1e1   :  { %1556 = vmatmul.mubr.f32.vlgmr.msra.gmra.mxu1 %v1318_v44  ;;  %v1319_v47 = vsub.f32 %v1317_v43, %v1318_v44 }
 0x1e2   :  { %1673 = vmatpush1.msra.mxu1 %v1281_v4  ;;  %1706 = vmatprep.mubr.f32.mxu1 %v3350_v1 }
 0x1e3   :  { %v1320_v48 = vand.u32 4294901760, %v1319_v47  ;;  %1827 = vmatprep.subr.mxu1 %v1826_v45 }
 0x1e5   :  { %1321 = vmatmul.mubr.f32.vlgmr.msra.gmra.mxu0 %v1320_v48  ;;  %1708 = vmatmul.mubr.f32.vlgmr.msra.gmra.mxu1 %v1316_v40 }
 0x1e6   :  { %1444 = vmatpush1.msra.mxu0 %v3576_v10  ;;  %1477 = vmatprep.mubr.f32.mxu0 %v3350_v1 }
 0x1e7   :  { %1833 = vmatpush1.msra.mxu1 %v1832_v50  ;;  %1866 = vmatprep.mubr.f32.mxu1 %v3350_v1 }
 0x1e8   :  { %1595 = vmatprep.subr.mxu0 %v1359_v14  ;;  %1982 = vmatprep.subr.mxu1 %v1744_v32 }
 0x1e9   :  { %1480 = vmatmul.mubr.f32.vlgmr.msra.gmra.mxu0 %v1317_v43  ;;  %1868 = vmatmul.mubr.f32.vlgmr.msra.gmra.mxu1 %v1316_v40 }
 0x1ea   :  { %1599 = vmatpush1.msra.mxu0 %v1365_v15  ;;  %1632 = vmatprep.mubr.f32.mxu0 %v3350_v1 }
 0x1eb   :  { %1984 = vmatpush1.msra.mxu1 %v1746_v35  ;;  %2017 = vmatprep.mubr.f32.mxu1 %v3350_v1 }
 0x1ec   :  { %1745 = vmatprep.subr.mxu0 %v1744_v32  ;;  %2136 = vmatprep.subr.mxu1 %v1744_v32 }
 0x1ed   :  { %1634 = vmatmul.mubr.f32.vlgmr.msra.gmra.mxu0 %v1316_v40  ;;  %2021 = vmatmul.mubr.f32.vlgmr.msra.gmra.mxu1 %v1318_v44 }
 0x1ee   :  { %1747 = vmatpush1.msra.mxu0 %v1746_v35  ;;  %1780 = vmatprep.mubr.f32.mxu0 %v3350_v1 }
 0x1ef   :  { %2138 = vmatpush1.msra.mxu1 %v1746_v35  ;;  %2171 = vmatprep.mubr.f32.mxu1 %v3350_v1 }
 0x1f0   :  { %1906 = vmatprep.subr.mxu0 %v1823_v34 }
 0x1f1   :  { %1786 = vmatmul.mubr.f32.vlgmr.msra.gmra.mxu0 %v1320_v48  ;;  %2173 = vmatmul.mubr.f32.vlgmr.msra.gmra.mxu1 %v1316_v40 }
 0x1f2   :  { %1909 = vmatpush1.msra.mxu0 %v1829_v37  ;;  %1942 = vmatprep.mubr.f32.mxu0 %v3350_v1  ;;  %v2283_v37 = vsel %vm1178_vm5, %v2281_v25, 0 }
 0x1f3   :  { %2060 = vmatprep.subr.mxu0 %v1824_v36  ;;  %2449 = vmatprep.mubr.f32.mxu1 %v3350_v1 }
 0x1f5   :  { %1945 = vmatmul.mubr.f32.vlgmr.msra.gmra.mxu0 %v1317_v43 }
 0x1f6   :  { %2064 = vmatpush1.msra.mxu0 %v1830_v42  ;;  %2097 = vmatprep.mubr.f32.mxu0 %v3350_v1 }
 0x1f9   :  { %2099 = vmatmul.mubr.f32.vlgmr.msra.gmra.mxu0 %v1316_v40 }
 0x1fa   :  { %2363 = vmatprep.mubr.f32.mxu0 %v3350_v1 }
 0x29d   :  { %v1404_v53 = vpop.f32.mrf.mxu1 }
 0x29f   :  { %v1406_v54 = vpop.f32.mrf.mxu1 }
 0x2a1   :  { %v1557_v55 = vpop.f32.mrf.mxu1 }
 0x2a3   :  { %v1559_v57 = vpop.f32.mrf.mxu1 }
 0x2a5   :  { %v1322_v58 = vpop.f32.mrf.mxu0  ;;  %v1709_v59 = vpop.f32.mrf.mxu1 }
 0x2a6   :  { %v1405_v62 = vadd.f32 %v1404_v53, %v1322_v58  ;;  %v3614_v53 = vand.u32 4294901760, %v2283_v37 }
 0x2a7   :  { %v1324_v60 = vpop.f32.mrf.mxu0  ;;  %v1711_v61 = vpop.f32.mrf.mxu1 }
 0x2a8   :  { %v1407_v2 = vadd.f32 %v1406_v54, %v1324_v60 }
 0x2a9   :  { %v1481_v63 = vpop.f32.mrf.mxu0  ;;  %v1869_v0 = vpop.f32.mrf.mxu1 }
 0x2aa   :  { %v1482_v4 = vadd.f32 %v1481_v63, %v1405_v62 }
 0x2ab   :  { %v1483_v5 = vpop.f32.mrf.mxu0  ;;  %v1871_v11 = vpop.f32.mrf.mxu1 }
 0x2ac   :  { %v1484_v9 = vadd.f32 %v1483_v5, %v1407_v2  ;;  %v1558_v10 = vadd.f32 %v1557_v55, %v1482_v4 }
 0x2ad   :  { %v1635_v13 = vpop.f32.mrf.mxu0  ;;  %v2022_v20 = vpop.f32.mrf.mxu1 }
 0x2ae   :  { %v1636_v14 = vadd.f32 %v1635_v13, %v1558_v10  ;;  %v1560_v15 = vadd.f32 %v1559_v57, %v1484_v9  ;;  %v3618_v13 = vsub.f32 %v2283_v37, %v3614_v53 }
 0x2af   :  { %v1637_v16 = vpop.f32.mrf.mxu0  ;;  %v2024_v31 = vpop.f32.mrf.mxu1 }
 0x2b0   :  { %v1710_v18 = vadd.f32 %v1709_v59, %v1636_v14  ;;  %v1638_v19 = vadd.f32 %v1637_v16, %v1560_v15 }
 0x2b1   :  { %v1787_v21 = vpop.f32.mrf.mxu0  ;;  %v2174_v48 = vpop.f32.mrf.mxu1 }
 0x2b2   :  { %v2179_v22 = vmul.f32 %v1710_v18, %v3448_v7  ;;  %v1712_v23 = vadd.f32 %v1711_v61, %v1638_v19  ;;  %v1870_v29 = vadd.f32 %v1869_v0, %v1787_v21  ;;  %v2261_v21 = vpop.permute.xlu0 %2260 }
 0x2b3   :  { %v1789_v24 = vpop.f32.mrf.mxu0  ;;  %v2176_v5 = vpop.f32.mrf.mxu1 }
 0x2b4   :  { %v2184_v26 = vsel %vm2183_vm9, %v2179_v22, 0.0  ;;  %v2216_v27 = vrot.slane %v2179_v22, 3  ;;  %v2180_v28 = vmul.f32 %v1712_v23, %v3443_v6  ;;  %v1872_v32 = vadd.f32 %v1871_v11, %v1789_v24 }
 0x2b5   :  { %v2185_v30 = vrot.slane %v2184_v26, 4  ;;  %v1946_v33 = vpop.f32.mrf.mxu0 }
 0x2b6   :  { %v2224_v34 = vsel %vm2183_vm9, %v2216_v27, 0.0  ;;  %v2191_v7 = vsel %vm2183_vm9, %v2180_v28, 0.0  ;;  %v2217_v35 = vrot.slane %v2180_v28, 3  ;;  %v1947_v36 = vadd.f32 %v1946_v33, %v1870_v29 }
 0x2b7   :  { %v2186_v38 = vadd.f32 %v2185_v30, %v2184_v26  ;;  %v2225_v39 = vrot.slane %v2224_v34, 4  ;;  %v2192_v40 = vrot.slane %v2191_v7, 4  ;;  %v1948_v41 = vpop.f32.mrf.mxu0 }
 0x2b8   :  { %v2231_v42 = vsel %vm2183_vm9, %v2217_v35, 0.0  ;;  %v1949_v6 = vadd.f32 %v1948_v41, %v1872_v32  ;;  %v2023_v43 = vadd.f32 %v2022_v20, %v1947_v36 }
 0x2b9   :  { %v2187_v44 = vrot.slane %v2186_v38, 2  ;;  %v2226_v45 = vadd.f32 %v2225_v39, %v2224_v34  ;;  %v2193_v46 = vadd.f32 %v2192_v40, %v2191_v7  ;;  %v2232_v47 = vrot.slane %v2231_v42, 4  ;;  %v2100_v50 = vpop.f32.mrf.mxu0  ;;  %v2271_v40 = vpop.permute.xlu0 %2270 }
 0x2ba   :  { %v2101_v54 = vadd.f32 %v2100_v50, %v2023_v43  ;;  %v2025_v55 = vadd.f32 %v2024_v31, %v1949_v6  ;;  %v3628_v39 = vand.u32 4294901760, %v3618_v13 }
 0x2bb   :  { %v2188_v57 = vadd.f32 %v2187_v44, %v2186_v38  ;;  %v2227_v58 = vrot.slane %v2226_v45, 2  ;;  %v2194_v59 = vrot.slane %v2193_v46, 2  ;;  %v2233_v60 = vadd.f32 %v2232_v47, %v2231_v42  ;;  %v2102_v61 = vpop.f32.mrf.mxu0 }
 0x2bc   :  { %v2175_v62 = vadd.f32 %v2174_v48, %v2101_v54  ;;  %v2103_v63 = vadd.f32 %v2102_v61, %v2025_v55 }
 0x2bd   :  { %v2228_v0 = vadd.f32 %v2227_v58, %v2226_v45  ;;  %v2195_v2 = vadd.f32 %v2194_v59, %v2193_v46  ;;  %v2234_v4 = vrot.slane %v2233_v60, 2  ;;  %v2189_v9 = vrot.slane %v2188_v57, 1 }
 0x2be   :  { %v2181_v10 = vmul.f32 %v2175_v62, %v3466_v17  ;;  %v2177_v11 = vadd.f32 %v2176_v5, %v2103_v63 }
 0x2bf   :  { %v2229_v14 = vrot.slane %v2228_v0, 1  ;;  %v2235_v15 = vadd.f32 %v2234_v4, %v2233_v60  ;;  %v2196_v16 = vrot.slane %v2195_v2, 1  ;;  %v2190_v25 = vadd.f32 %v2189_v9, %v2188_v57 }
 0x2c0   :  { %v2198_v18 = vsel %vm2183_vm9, %v2181_v10, 0.0  ;;  %v2218_v19 = vrot.slane %v2181_v10, 3  ;;  %v2182_v20 = vmul.f32 %v2177_v11, %v3457_v12  ;;  %v2367_v57 = vsub.f32 %v3618_v13, %v3628_v39 }
 0x2c1   :  { %v2230_v22 = vadd.f32 %v2229_v14, %v2228_v0  ;;  %v2236_v23 = vrot.slane %v2235_v15, 1  ;;  %v2199_v24 = vrot.slane %v2198_v18, 4  ;;  %v2197_v32 = vadd.f32 %v2196_v16, %v2195_v2 }
 0x2c2   :  { %v2238_v17 = vsel %vm2183_vm9, %v2218_v19, 0.0  ;;  %v2205_v26 = vsel %vm2183_vm9, %v2182_v20, 0.0  ;;  %v2219_v27 = vrot.slane %v2182_v20, 3  ;;  %v2368_v10 = vand.u32 4294901760, %v2367_v57 }
 0x2c3   :  { %v2237_v28 = vadd.f32 %v2236_v23, %v2235_v15  ;;  %v2200_v29 = vadd.f32 %v2199_v24, %v2198_v18  ;;  %v2239_v30 = vrot.slane %v2238_v17, 4  ;;  %v2206_v31 = vrot.slane %v2205_v26, 4 }
 0x2c4   :  { %v2245_v33 = vsel %vm2183_vm9, %v2219_v27, 0.0  ;;  %v2253_v12 = vsel %vm2252_vm10, %v2190_v25, %v2230_v22 }
 0x2c5   :  { %v2201_v34 = vrot.slane %v2200_v29, 2  ;;  %v2240_v7 = vadd.f32 %v2239_v30, %v2238_v17  ;;  %v2207_v35 = vadd.f32 %v2206_v31, %v2205_v26  ;;  %v2246_v36 = vrot.slane %v2245_v33, 4 }
 0x2c6   :  { %v2254_v37 = vsel %vm2252_vm10, %v2197_v32, %v2237_v28  ;;  %v2263_v38 = vmul.f32 %v2261_v21, %v2253_v12 }
 0x2c7   :  { %v2202_v41 = vadd.f32 %v2201_v34, %v2200_v29  ;;  %v2241_v42 = vrot.slane %v2240_v7, 2  ;;  %v2208_v6 = vrot.slane %v2207_v35, 2  ;;  %v2247_v43 = vadd.f32 %v2246_v36, %v2245_v33 }
 0x2c8   :  { %v2264_v44 = vmul.f32 %v2261_v21, %v2254_v37  ;;  %v2273_v45 = vadd.f32 %v2271_v40, %v2263_v38 }
 0x2c9   :  { %v2203_v46 = vrot.slane %v2202_v41, 1  ;;  %v2242_v47 = vadd.f32 %v2241_v42, %v2240_v7  ;;  %v2209_v48 = vadd.f32 %v2208_v6, %v2207_v35  ;;  %v2248_v50 = vrot.slane %v2247_v43, 2  ;;  %v3658_v42 = vpop.permute.xlu0 %1012 }
 0x2ca   :  { %v2274_v54 = vadd.f32 %v2271_v40, %v2264_v44  ;;  %v2277_v55 = vmax.f32 %v2273_v45, 0.0 }
 0x2cb   :  { %v2243_v58 = vrot.slane %v2242_v47, 1  ;;  %v2210_v59 = vrot.slane %v2209_v48, 1  ;;  %v2249_v60 = vadd.f32 %v2248_v50, %v2247_v43  ;;  %v2204_v63 = vadd.f32 %v2203_v46, %v2202_v41 }
 0x2cc   :  { %v2278_v61 = vmax.f32 %v2274_v54, 0.0  ;;  %v2286_v62 = vsel %vm1240_vm3, %v2277_v55, 0 }
 0x2cd   :  { %v2244_v0 = vadd.f32 %v2243_v58, %v2242_v47  ;;  %v2250_v2 = vrot.slane %v2249_v60, 1  ;;  %v2329_v4 = vand.u32 4294901760, %v2286_v62  ;;  %v2211_v5 = vadd.f32 %v2210_v59, %v2209_v48  ;;  %v3660_v45 = vpop.permute.xlu0 %3230 }
 0x2ce   :  { %v2289_v9 = vsel %vm1240_vm3, %v2278_v61, 0 }
 0x2cf   :  { %v2251_v11 = vadd.f32 %v2250_v2, %v2249_v60  ;;  %v2327_v14 = vand.u32 4294901760, %v2289_v9  ;;  %v2412_v15 = vsub.f32 %v2286_v62, %v2329_v4  ;;  %v2255_v16 = vsel %vm2252_vm10, %v2204_v63, %v2244_v0 }
 0x2d0   :  { %v2265_v18 = vmul.f32 %v2261_v21, %v2255_v16  ;;  %v1016_v16 = vmul.f32 %v3658_v42, %v3563_v52 }
 0x2d1   :  { %2328 = vmatprep.subr.mxu0 %v2327_v14  ;;  %v2406_v19 = vsub.f32 %v2289_v9, %v2327_v14  ;;  %v2413_v20 = vand.u32 4294901760, %v2412_v15  ;;  %v2256_v22 = vsel %vm2252_vm10, %v2211_v5, %v2251_v11  ;;  %v1023_v58 = vpop.permute.xlu0 %1022 }
 0x2d2   :  { %2330 = vmatpush1.msra.mxu0 %v2329_v4  ;;  %v2266_v23 = vmul.f32 %v2261_v21, %v2256_v22  ;;  %v2275_v24 = vadd.f32 %v2271_v40, %v2265_v18 }
 0x2d3   :  { %2369 = vmatmul.mubr.f32.vlgmr.msra.gmra.mxu0 %v2368_v10  ;;  %2489 = vmatprep.subr.mxu0 %v2406_v19  ;;  %v2407_v25 = vand.u32 4294901760, %v2406_v19  ;;  %v2414_v17 = vsub.f32 %v2412_v15, %v2413_v20 }
 0x2d4   :  { %2492 = vmatpush1.msra.mxu0 %v2412_v15  ;;  %2525 = vmatprep.mubr.f32.mxu0 %v3350_v1  ;;  %v2276_v26 = vadd.f32 %v2271_v40, %v2266_v23  ;;  %v2279_v27 = vmax.f32 %v2275_v24, 0.0 }
 0x2d5   :  { %2643 = vmatprep.subr.mxu0 %v2407_v25  ;;  %v2408_v28 = vsub.f32 %v2406_v19, %v2407_v25  ;;  %v2415_v21 = vand.u32 4294901760, %v2414_v17  ;;  %v3241_v11 = vpop.permute.xlu0 %3240  ;;  %v1026_v25 = vadd.f32 %v1023_v58, %v1016_v16 }
 0x2d6   :  { %v2280_v29 = vmax.f32 %v2276_v26, 0.0  ;;  %v2292_v30 = vsel %vm1240_vm3, %v2279_v27, 0 }
 0x2d7   :  { %2528 = vmatmul.mubr.f32.vlgmr.msra.gmra.mxu0 %v3618_v13  ;;  %v2409_v31 = vand.u32 4294901760, %v2408_v28  ;;  %v2794_v32 = vand.u32 4294901760, %v2292_v30 }
 0x2d8   :  { %2647 = vmatpush1.msra.mxu0 %v2413_v20  ;;  %2680 = vmatprep.mubr.f32.mxu0 %v3350_v1  ;;  %v2295_v33 = vsel %vm1240_vm3, %v2280_v29, 0  ;;  %v933_v29 = vadd.f32 %v3602_v56, %v3565_v3  ;;  %v1017_v3 = vmul.f32 %v3658_v42, %v3567_v8 }
 0x2d9   :  { %2410 = vmatprep.subr.mxu1 %v2409_v31  ;;  %v2792_v12 = vand.u32 4294901760, %v2295_v33  ;;  %v2877_v34 = vsub.f32 %v2292_v30, %v2794_v32 }
 0x2da   :  { %2416 = vmatpush1.msra.mxu1 %v2415_v21 }
 0x2db   :  { %2451 = vmatmul.mubr.f32.vlgmr.msra.gmra.mxu1 %v3614_v53  ;;  %2565 = vmatprep.subr.mxu1 %v2327_v14  ;;  %v2871_v7 = vsub.f32 %v2295_v33, %v2792_v12  ;;  %v2878_v35 = vand.u32 4294901760, %v2877_v34 }
 0x2dc   :  { %2682 = vmatmul.mubr.f32.vlgmr.msra.gmra.mxu0 %v3614_v53  ;;  %2567 = vmatpush1.msra.mxu1 %v2329_v4 }
 0x2dd   :  { %2719 = vmatprep.subr.mxu1 %v2327_v14  ;;  %2793 = vmatprep.subr.mxu0 %v2792_v12  ;;  %v2872_v36 = vand.u32 4294901760, %v2871_v7  ;;  %v2879_v38 = vsub.f32 %v2877_v34, %v2878_v35 }
 0x2de   :  { %2600 = vmatprep.mubr.f32.mxu1 %v3350_v1  ;;  %2795 = vmatpush1.msra.mxu0 %v2794_v32 }
 0x2df   :  { %2828 = vmatprep.mubr.f32.mxu0 %v3350_v1  ;;  %2604 = vmatmul.mubr.f32.vlgmr.msra.gmra.mxu1 %v3628_v39  ;;  %v2873_v37 = vsub.f32 %v2871_v7, %v2872_v36  ;;  %v2880_v41 = vand.u32 4294901760, %v2879_v38  ;;  %v1007_v38 = vadd.f32 %v3600_v51, %v933_v29 }
 0x2e0   :  { %2721 = vmatpush1.msra.mxu1 %v2329_v4  ;;  %2834 = vmatmul.mubr.f32.vlgmr.msra.gmra.mxu0 %v2368_v10  ;;  %v1015_v10 = vmul.f32 %v3658_v42, %v3561_v49 }
 0x2e1   :  { %2954 = vmatprep.subr.mxu0 %v2871_v7  ;;  %2754 = vmatprep.mubr.f32.mxu1 %v3350_v1  ;;  %v2874_v40 = vand.u32 4294901760, %v2873_v37 }
 0x2e2   :  { %2957 = vmatpush1.msra.mxu0 %v2877_v34  ;;  %2990 = vmatprep.mubr.f32.mxu0 %v3350_v1  ;;  %v1025_v20 = vadd.f32 %v1023_v58, %v1015_v10 }
 0x2e3   :  { %3108 = vmatprep.subr.mxu0 %v2872_v36  ;;  %2756 = vmatmul.mubr.f32.vlgmr.msra.gmra.mxu1 %v3614_v53 }
 0x2e4   :  { %2993 = vmatmul.mubr.f32.vlgmr.msra.gmra.mxu0 %v3618_v13  ;;  %2875 = vmatprep.subr.mxu1 %v2874_v40 }
 0x2e5   :  { %3112 = vmatpush1.msra.mxu0 %v2878_v35  ;;  %2881 = vmatpush1.msra.mxu1 %v2880_v41 }
 0x2e6   :  { %2914 = vmatprep.mubr.f32.mxu1 %v3350_v1  ;;  %3030 = vmatprep.subr.mxu1 %v2792_v12 }
 0x2e7   :  { %2916 = vmatmul.mubr.f32.vlgmr.msra.gmra.mxu1 %v3614_v53  ;;  %3145 = vmatprep.mubr.f32.mxu0 %v3350_v1 }
 0x2e8   :  { %3032 = vmatpush1.msra.mxu1 %v2794_v32  ;;  %3065 = vmatprep.mubr.f32.mxu1 %v3350_v1 }
 0x2e9   :  { %3184 = vmatprep.subr.mxu1 %v2792_v12  ;;  %3147 = vmatmul.mubr.f32.vlgmr.msra.gmra.mxu0 %v3614_v53 }
 0x2eb   :  { %3069 = vmatmul.mubr.f32.vlgmr.msra.gmra.mxu1 %v3628_v39 }
 0x2ec   :  { %3186 = vmatpush1.msra.mxu1 %v2794_v32  ;;  %3219 = vmatprep.mubr.f32.mxu1 %v3350_v1 }
 0x2ef   :  { %3221 = vmatmul.mubr.f32.vlgmr.msra.gmra.mxu1 %v3614_v53 }
 0x393   :  { %v2370_v13 = vpop.f32.mrf.mxu0 }
 0x395   :  { %v2372_v6 = vpop.f32.mrf.mxu0 }
 0x397   :  { %v2529_v43 = vpop.f32.mrf.mxu0 }
 0x399   :  { %v2531_v44 = vpop.f32.mrf.mxu0 }
 0x39b   :  { %v2452_v46 = vpop.f32.mrf.mxu1 }
 0x39c   :  { %v2453_v47 = vadd.f32 %v2452_v46, %v2370_v13  ;;  %v2683_v48 = vpop.f32.mrf.mxu0 }
 0x39d   :  { %v2454_v50 = vpop.f32.mrf.mxu1 }
 0x39e   :  { %v2455_v54 = vadd.f32 %v2454_v50, %v2372_v6  ;;  %v2530_v55 = vadd.f32 %v2529_v43, %v2453_v47  ;;  %v2685_v39 = vpop.f32.mrf.mxu0  ;;  %v1018_v43 = vmul.f32 %v3658_v42, %v1007_v38 }
 0x39f   :  { %v2605_v57 = vpop.f32.mrf.mxu1 }
 0x3a0   :  { %v2532_v1 = vadd.f32 %v2531_v44, %v2455_v54  ;;  %v2606_v59 = vadd.f32 %v2605_v57, %v2530_v55  ;;  %v2835_v53 = vpop.f32.mrf.mxu0  ;;  %v1027_v44 = vadd.f32 %v1023_v58, %v1017_v3 }
 0x3a1   :  { %v2607_v60 = vpop.f32.mrf.mxu1 }
 0x3a2   :  { %v2608_v61 = vadd.f32 %v2607_v60, %v2532_v1  ;;  %v2684_v62 = vadd.f32 %v2683_v48, %v2606_v59  ;;  %v2837_v63 = vpop.f32.mrf.mxu0  ;;  %v1028_v48 = vadd.f32 %v1023_v58, %v1018_v43 }
 0x3a3   :  { %v2757_v0 = vpop.f32.mrf.mxu1 }
 0x3a4   :  { %v2686_v2 = vadd.f32 %v2685_v39, %v2608_v61  ;;  %v2758_v4 = vadd.f32 %v2757_v0, %v2684_v62  ;;  %v2994_v5 = vpop.f32.mrf.mxu0 }
 0x3a5   :  { %v2759_v9 = vpop.f32.mrf.mxu1 }
 0x3a6   :  { %v3233_v14 = vmul.f32 %v3660_v45, %v2758_v4  ;;  %v2760_v15 = vadd.f32 %v2759_v9, %v2686_v2  ;;  %v2996_v19 = vpop.f32.mrf.mxu0 }
 0x3a7   :  { %v2917_v18 = vpop.f32.mrf.mxu1 }
 0x3a8   :  { %v3243_v22 = vadd.f32 %v3241_v11, %v3233_v14  ;;  %v3234_v23 = vmul.f32 %v3660_v45, %v2760_v15  ;;  %v2918_v24 = vadd.f32 %v2917_v18, %v2835_v53 }
 0x3a9   :  { %v2919_v17 = vpop.f32.mrf.mxu1  ;;  %v3148_v31 = vpop.f32.mrf.mxu0 }
 0x3aa   :  { %v3247_v26 = vadd.f32 %v3243_v22, %v1025_v20  ;;  %v3244_v27 = vadd.f32 %v3241_v11, %v3234_v23  ;;  %v2920_v28 = vadd.f32 %v2919_v17, %v2837_v63  ;;  %v2995_v49 = vadd.f32 %v2994_v5, %v2918_v24 }
 0x3ab   :  { %v3070_v30 = vpop.f32.mrf.mxu1  ;;  %v3150_v36 = vpop.f32.mrf.mxu0 }
 0x3ac   :  { %v3251_v32 = vmax.f32 %v3247_v26, 0.0  ;;  %v3248_v52 = vadd.f32 %v3244_v27, %v1026_v25  ;;  %v2997_v21 = vadd.f32 %v2996_v19, %v2920_v28  ;;  %v3071_v33 = vadd.f32 %v3070_v30, %v2995_v49 }
 0x3ad   :  { %v3072_v12 = vpop.f32.mrf.mxu1 }
 0x3ae   :  { %3255 = vst [vmem:[#allocation5] sm:$0xff] %v3251_v32  ;;  %v3252_v34 = vmax.f32 %v3248_v52, 0.0  ;;  %v3073_v7 = vadd.f32 %v3072_v12, %v2997_v21  ;;  %v3149_v35 = vadd.f32 %v3148_v31, %v3071_v33 }
 0x3af   :  { %v3222_v37 = vpop.f32.mrf.mxu1 }
 0x3b0   :  { %3256 = vst [vmem:[#allocation5 + $0x8] sm:$0xff] %v3252_v34  ;;  %v3151_v40 = vadd.f32 %v3150_v36, %v3073_v7  ;;  %v3223_v41 = vadd.f32 %v3222_v37, %v3149_v35 }
 0x3b1   :  { %v3224_v13 = vpop.f32.mrf.mxu1 }
 0x3b2   :  { %v3235_v56 = vmul.f32 %v3660_v45, %v3223_v41  ;;  %v3225_v6 = vadd.f32 %v3224_v13, %v3151_v40 }
 0x3b4   :  { %v3245_v46 = vadd.f32 %v3241_v11, %v3235_v56  ;;  %v3236_v47 = vmul.f32 %v3660_v45, %v3225_v6 }
 0x3b6   :  { %v3249_v50 = vadd.f32 %v3245_v46, %v1027_v44  ;;  %v3246_v54 = vadd.f32 %v3241_v11, %v3236_v47 }
 0x3b8   :  { %v3253_v51 = vmax.f32 %v3249_v50, 0.0  ;;  %v3250_v55 = vadd.f32 %v3246_v54, %v1028_v48 }
 0x3ba   :  { %3257 = vst [vmem:[#allocation5 + $0x10] sm:$0xff] %v3253_v51  ;;  %v3254_v39 = vmax.f32 %v3250_v55, 0.0 }
 0x3bc   :  { %3258 = vst [vmem:[#allocation5 + $0x18] sm:$0xff] %v3254_v39 }
 0x3bd   :  { %3335 = shalt.err (!%p3332_p9)
}
 0x3be   :  { %3268 = dma.vmem_to_hbm [thread:$0]  %s3266_s11, 512, %s3692_s13, [#allocation4]  }
 0x3bf   :  { %3346 = dma.done.wait [#allocation4], 512  }
 0x3c0   :  { %3347 = vsyncadd [#allocation4], 4294966784 }
 0x3c1   :  { %3272 = vsyncpa [#allocation3], 1 }
 0x3c2   :  { %3273 = vsyncpa [#allocation4], 1 }

</bundles_post_ra>
